<compile_context>
chip_gen: v5e
topology: v5e:2x2
jax: 0.10.0
libtpu: 0.0.40
codegen_flags: <defaults>
</compile_context>

<pallas_src>
import functools

import numpy as np
import jax
import jax.numpy as jnp
from jax.experimental import pallas as pl
from jax.experimental.pallas import tpu as pltpu


_LANE = 128
_SUBLANE = 8
_PAD = _LANE * _SUBLANE  # matched-pair count padded up to a multiple of 1024


def _l1_giou_kernel(n_ref, pred_ref, tgt_ref, out_ref, *, l1_w, giou_w):
    """pred_ref/tgt_ref: (4, 8, L) f32 cxcywh planes. n_ref: (1,1) i32 valid count.

    out_ref: (1, 2) f32 in SMEM -> [L1 loss, GIoU loss].
    """
    p = pred_ref[...]          # (4, 8, L)
    t = tgt_ref[...]           # (4, 8, L)
    L = p.shape[2]

    # Validity mask: original pair index j = sublane * L + lane (row-major reshape).
    sub = jax.lax.broadcasted_iota(jnp.int32, (_SUBLANE, L), 0)
    lane = jax.lax.broadcasted_iota(jnp.int32, (_SUBLANE, L), 1)
    valid = ((sub * L + lane) < n_ref[0, 0]).astype(jnp.float32)   # (8, L)

    # ---- L1 loss in cxcywh space (== F.l1_loss(...,'none').sum()), masked.
    d = jnp.abs(p - t)                          # (4, 8, L)
    l1_per_pair = d[0] + d[1] + d[2] + d[3]     # (8, L)
    l1 = jnp.sum(l1_per_pair * valid) * l1_w

    # ---- cxcywh -> xyxy on dense (8, L) planes.
    pcx, pcy, pw, ph = p[0], p[1], p[2], p[3]
    tcx, tcy, tw, th = t[0], t[1], t[2], t[3]
    px1 = pcx - 0.5 * pw
    px2 = pcx + 0.5 * pw
    py1 = pcy - 0.5 * ph
    py2 = pcy + 0.5 * ph
    tx1 = tcx - 0.5 * tw
    tx2 = tcx + 0.5 * tw
    ty1 = tcy - 0.5 * th
    ty2 = tcy + 0.5 * th

    area_p = (px2 - px1) * (py2 - py1)
    area_t = (tx2 - tx1) * (ty2 - ty1)

    # per-pair intersection / union
    iw = jnp.maximum(jnp.minimum(px2, tx2) - jnp.maximum(px1, tx1), 0.0)
    ih = jnp.maximum(jnp.minimum(py2, ty2) - jnp.maximum(py1, ty1), 0.0)
    inter = iw * ih
    union = area_p + area_t - inter
    # approx reciprocal goes to the EUP slot -> divide effectively free.
    iou = inter * pl.reciprocal(union, approx=True)

    # smallest enclosing box
    cw = jnp.maximum(px2, tx2) - jnp.minimum(px1, tx1)
    ch = jnp.maximum(py2, ty2) - jnp.minimum(py1, ty1)
    area_c = cw * ch
    giou = iou - (area_c - union) * pl.reciprocal(area_c, approx=True)

    giou_loss = jnp.sum((1.0 - giou) * valid) * giou_w

    out_ref[0, 0] = l1
    out_ref[0, 1] = giou_loss


@functools.partial(jax.jit, static_argnames=("l1_w", "giou_w"))
def _l1_giou_forward(pred_flat, gt_concat, pred_idx, tgt_idx, n_valid, l1_w, giou_w):
    """Jitted path: dynamic gather + layout + Pallas kernel.

    pred_flat: (B*Q, 4) f32, gt_concat: (G, 4) f32,
    pred_idx / tgt_idx: (n_pad,) i32 (padded with 0), n_valid: () i32.
    Only shape changes retrace; a new matching (same n_pad) does not.
    """
    n_pad = pred_idx.shape[0]
    L = n_pad // _SUBLANE

    p = jnp.take(pred_flat.astype(jnp.float32), pred_idx, axis=0)   # (n_pad, 4)
    t = jnp.take(gt_concat.astype(jnp.float32), tgt_idx, axis=0)    # (n_pad, 4)

    # coordinate-major planes for the kernel: (4, 8, L)
    p = p.T.reshape(4, _SUBLANE, L)
    t = t.T.reshape(4, _SUBLANE, L)
    n_smem = jnp.reshape(n_valid.astype(jnp.int32), (1, 1))

    kern = functools.partial(_l1_giou_kernel, l1_w=float(l1_w), giou_w=float(giou_w))
    out = pl.pallas_call(
        kern,
        out_shape=jax.ShapeDtypeStruct((1, 2), jnp.float32),
        in_specs=[
            pl.BlockSpec(memory_space=pltpu.SMEM),   # valid count
            pl.BlockSpec(memory_space=pltpu.VMEM),   # pred planes
            pl.BlockSpec(memory_space=pltpu.VMEM),   # tgt planes
        ],
        out_specs=pl.BlockSpec(memory_space=pltpu.SMEM),
    )(n_smem, p, t)
    return out[0, 0], out[0, 1]


def l1_giou_loss(pred_bbox, gt_bbox, indices,
                 loss_l1_weight=1.0, loss_giou_weight=1.0):
    """JAX/Pallas port of L1GIoULoss.forward.

    pred_bbox: (B, Q, 4) cxcywh
    gt_bbox:   list of (Ni, 4) cxcywh arrays
    indices:   list of (src_idx, tgt_idx) per-image index sequences
    """
    B, Q, _ = pred_bbox.shape

    # Build flat gather indices on the host (cheap numpy), pad to a fixed size
    # so the jitted gather+kernel does not recompile for a new matching.
    pred_flat_idx, tgt_flat_idx = [], []
    offset = 0
    for i, (src, tgt) in enumerate(indices):
        for s, t in zip(src, tgt):
            pred_flat_idx.append(i * Q + int(s))
            tgt_flat_idx.append(offset + int(t))
        offset += int(gt_bbox[i].shape[0])

    n = len(pred_flat_idx)
    n_pad = max(_PAD, ((n + _PAD - 1) // _PAD) * _PAD)

    pred_idx = np.zeros((n_pad,), dtype=np.int32)
    tgt_idx = np.zeros((n_pad,), dtype=np.int32)
    pred_idx[:n] = np.asarray(pred_flat_idx, dtype=np.int32)
    tgt_idx[:n] = np.asarray(tgt_flat_idx, dtype=np.int32)

    pred_flat = pred_bbox.reshape(B * Q, 4)
    # NOTE: if per-image gt counts change, this concat shape changes and the
    # jitted path retraces once per new total-gt count (pad here too if needed).
    gt_concat = jnp.concatenate(list(gt_bbox), axis=0)

    l1, giou = _l1_giou_forward(
        pred_flat, gt_concat,
        jnp.asarray(pred_idx), jnp.asarray(tgt_idx), jnp.int32(n),
        float(loss_l1_weight), float(loss_giou_weight))
    return {"loss_bbox_L1": l1, "loss_bbox_giou": giou}


# ------------------------- pure-JAX reference -------------------------------
def _ref_loss(pred_bbox, gt_bbox, indices, l1_w, giou_w):
    batch_idx, src_idx = [], []
    for i, (src, _) in enumerate(indices):
        batch_idx += [i] * len(src)
        src_idx += [int(s) for s in src]
    p = pred_bbox[jnp.array(batch_idx), jnp.array(src_idx)].astype(jnp.float32)
    t = jnp.concatenate(
        [gb[jnp.array([int(j) for j in ti])] for gb, (_, ti) in zip(gt_bbox, indices)],
        axis=0).astype(jnp.float32)

    l1 = jnp.sum(jnp.abs(p - t)) * l1_w

    def to_xyxy(b):
        cx, cy, w, h = b[:, 0], b[:, 1], b[:, 2], b[:, 3]
        return jnp.stack([cx - 0.5 * w, cy - 0.5 * h, cx + 0.5 * w, cy + 0.5 * h], axis=1)

    pb, tb = to_xyxy(p), to_xyxy(t)
    ap = (pb[:, 2] - pb[:, 0]) * (pb[:, 3] - pb[:, 1])
    at = (tb[:, 2] - tb[:, 0]) * (tb[:, 3] - tb[:, 1])
    iw = jnp.maximum(jnp.minimum(pb[:, 2], tb[:, 2]) - jnp.maximum(pb[:, 0], tb[:, 0]), 0.0)
    ih = jnp.maximum(jnp.minimum(pb[:, 3], tb[:, 3]) - jnp.maximum(pb[:, 1], tb[:, 1]), 0.0)
    inter = iw * ih
    union = ap + at - inter
    iou = inter / union
    cw = jnp.maximum(pb[:, 2], tb[:, 2]) - jnp.minimum(pb[:, 0], tb[:, 0])
    ch = jnp.maximum(pb[:, 3], tb[:, 3]) - jnp.minimum(pb[:, 1], tb[:, 1])
    ac = cw * ch
    giou = iou - (ac - union) / ac
    return l1, jnp.sum(1.0 - giou) * giou_w


if __name__ == "__main__":
    key = jax.random.PRNGKey(0)
    k1, k2, k3, k4, k5, k6 = jax.random.split(key, 6)

    B, Q = 2, 8  # batch of 2 images, 8 queries each, 4 box coords (cxcywh)

    def rand_boxes(kc, kwh, shape):
        cxy = jax.random.uniform(kc, shape[:-1] + (2,), minval=0.3, maxval=0.7)
        wh = jax.random.uniform(kwh, shape[:-1] + (2,), minval=0.1, maxval=0.4)
        return jnp.concatenate([cxy, wh], axis=-1).astype(jnp.float32)

    pred_bbox = rand_boxes(k1, k2, (B, Q, 4))          # (2, 8, 4)
    gt_bbox = [rand_boxes(k3, k4, (3, 4)),             # image 0: 3 gt boxes
               rand_boxes(k5, k6, (4, 4))]             # image 1: 4 gt boxes

    # Two different Hungarian matchings (same shapes -> second call reuses the
    # already-jitted gather+kernel; no recompilation).
    matchings = [
        [([0, 2, 5], [1, 0, 2]), ([1, 3, 4, 6], [0, 3, 1, 2])],
        [([1, 4], [2, 0]), ([0, 2, 7], [1, 3, 0])],
    ]

    for indices in matchings:
        out = l1_giou_loss(pred_bbox, gt_bbox, indices,
                           loss_l1_weight=1.0, loss_giou_weight=1.0)
        jax.block_until_ready(out)

        ref_l1, ref_giou = _ref_loss(pred_bbox, gt_bbox, indices, 1.0, 1.0)
        # L1 is computed exactly.
        assert jnp.allclose(out["loss_bbox_L1"], ref_l1, rtol=1e-5, atol=1e-5)
        # GIoU uses pl.reciprocal(approx=True) -> small (~1e-3 rel) deviation.
        assert jnp.allclose(out["loss_bbox_giou"], ref_giou, rtol=2e-2, atol=2e-2)

    print("KERNEL_OK")
</pallas_src>

<mosaic_0001>
module attributes {stable_mosaic.version = 11 : i64} {
  func.func @_l1_giou_kernel(%arg0: memref<1x1xi32, #tpu.memory_space<smem>>, %arg1: memref<4x8x128xf32, #tpu.memory_space<vmem>>, %arg2: memref<4x8x128xf32, #tpu.memory_space<vmem>>, %arg3: memref<1x2xf32, #tpu.memory_space<smem>>) attributes {dimension_semantics = [], scalar_prefetch = 0 : i64, scratch_operands = 0 : i64, tpu.core_type = #tpu.core_type<tc>} {
    %c0 = arith.constant 0 : index
    %c0_0 = arith.constant 0 : index
    %c0_1 = arith.constant 0 : index
    %0 = vector.load %arg1[%c0, %c0_0, %c0_1] : memref<4x8x128xf32, #tpu.memory_space<vmem>>, vector<4x8x128xf32>
    %c0_2 = arith.constant 0 : index
    %c0_3 = arith.constant 0 : index
    %c0_4 = arith.constant 0 : index
    %1 = vector.load %arg2[%c0_2, %c0_3, %c0_4] : memref<4x8x128xf32, #tpu.memory_space<vmem>>, vector<4x8x128xf32>
    %2 = tpu.iota {dimensions = array<i32: 0>} : vector<8x128xi32>
    %3 = tpu.iota {dimensions = array<i32: 1>} : vector<8x128xi32>
    %c128_i32 = arith.constant 128 : i32
    %4 = vector.broadcast %c128_i32 : i32 to vector<8x128xi32>
    %5 = arith.muli %2, %4 : vector<8x128xi32>
    %6 = arith.addi %5, %3 : vector<8x128xi32>
    %c0_5 = arith.constant 0 : index
    %c0_6 = arith.constant 0 : index
    %7 = memref.load %arg0[%c0_5, %c0_6] : memref<1x1xi32, #tpu.memory_space<smem>>
    %8 = vector.broadcast %7 : i32 to vector<8x128xi32>
    %9 = arith.cmpi slt, %6, %8 : vector<8x128xi32>
    %10 = arith.extui %9 : vector<8x128xi1> to vector<8x128xi32>
    %11 = arith.sitofp %10 : vector<8x128xi32> to vector<8x128xf32>
    %12 = arith.subf %0, %1 : vector<4x8x128xf32>
    %13 = math.absf %12 : vector<4x8x128xf32>
    %14 = vector.extract_strided_slice %13 {offsets = [0, 0, 0], sizes = [1, 8, 128], strides = [1, 1, 1]} : vector<4x8x128xf32> to vector<1x8x128xf32>
    %15 = vector.shape_cast %14 : vector<1x8x128xf32> to vector<8x128xf32>
    %16 = vector.extract_strided_slice %13 {offsets = [1, 0, 0], sizes = [1, 8, 128], strides = [1, 1, 1]} : vector<4x8x128xf32> to vector<1x8x128xf32>
    %17 = vector.shape_cast %16 : vector<1x8x128xf32> to vector<8x128xf32>
    %18 = arith.addf %15, %17 : vector<8x128xf32>
    %19 = vector.extract_strided_slice %13 {offsets = [2, 0, 0], sizes = [1, 8, 128], strides = [1, 1, 1]} : vector<4x8x128xf32> to vector<1x8x128xf32>
    %20 = vector.shape_cast %19 : vector<1x8x128xf32> to vector<8x128xf32>
    %21 = arith.addf %18, %20 : vector<8x128xf32>
    %22 = vector.extract_strided_slice %13 {offsets = [3, 0, 0], sizes = [1, 8, 128], strides = [1, 1, 1]} : vector<4x8x128xf32> to vector<1x8x128xf32>
    %23 = vector.shape_cast %22 : vector<1x8x128xf32> to vector<8x128xf32>
    %24 = arith.addf %21, %23 : vector<8x128xf32>
    %25 = arith.mulf %24, %11 : vector<8x128xf32>
    %26 = vector.shape_cast %25 : vector<8x128xf32> to vector<1x8x128xf32>
    %cst = arith.constant dense<0.000000e+00> : vector<1xf32>
    %27 = vector.multi_reduction <add>, %26, %cst [1, 2] : vector<1x8x128xf32> to vector<1xf32>
    %28 = vector.shape_cast %27 : vector<1xf32> to vector<1x1x1xf32>
    %29 = vector.extract %28[0, 0, 0] : f32 from vector<1x1x1xf32>
    %cst_7 = arith.constant 1.000000e+00 : f32
    %30 = arith.mulf %29, %cst_7 : f32
    %31 = vector.extract_strided_slice %0 {offsets = [0, 0, 0], sizes = [1, 8, 128], strides = [1, 1, 1]} : vector<4x8x128xf32> to vector<1x8x128xf32>
    %32 = vector.shape_cast %31 : vector<1x8x128xf32> to vector<8x128xf32>
    %33 = vector.extract_strided_slice %0 {offsets = [1, 0, 0], sizes = [1, 8, 128], strides = [1, 1, 1]} : vector<4x8x128xf32> to vector<1x8x128xf32>
    %34 = vector.shape_cast %33 : vector<1x8x128xf32> to vector<8x128xf32>
    %35 = vector.extract_strided_slice %0 {offsets = [2, 0, 0], sizes = [1, 8, 128], strides = [1, 1, 1]} : vector<4x8x128xf32> to vector<1x8x128xf32>
    %36 = vector.shape_cast %35 : vector<1x8x128xf32> to vector<8x128xf32>
    %37 = vector.extract_strided_slice %0 {offsets = [3, 0, 0], sizes = [1, 8, 128], strides = [1, 1, 1]} : vector<4x8x128xf32> to vector<1x8x128xf32>
    %38 = vector.shape_cast %37 : vector<1x8x128xf32> to vector<8x128xf32>
    %39 = vector.extract_strided_slice %1 {offsets = [0, 0, 0], sizes = [1, 8, 128], strides = [1, 1, 1]} : vector<4x8x128xf32> to vector<1x8x128xf32>
    %40 = vector.shape_cast %39 : vector<1x8x128xf32> to vector<8x128xf32>
    %41 = vector.extract_strided_slice %1 {offsets = [1, 0, 0], sizes = [1, 8, 128], strides = [1, 1, 1]} : vector<4x8x128xf32> to vector<1x8x128xf32>
    %42 = vector.shape_cast %41 : vector<1x8x128xf32> to vector<8x128xf32>
    %43 = vector.extract_strided_slice %1 {offsets = [2, 0, 0], sizes = [1, 8, 128], strides = [1, 1, 1]} : vector<4x8x128xf32> to vector<1x8x128xf32>
    %44 = vector.shape_cast %43 : vector<1x8x128xf32> to vector<8x128xf32>
    %45 = vector.extract_strided_slice %1 {offsets = [3, 0, 0], sizes = [1, 8, 128], strides = [1, 1, 1]} : vector<4x8x128xf32> to vector<1x8x128xf32>
    %46 = vector.shape_cast %45 : vector<1x8x128xf32> to vector<8x128xf32>
    %cst_8 = arith.constant 5.000000e-01 : f32
    %47 = vector.broadcast %cst_8 : f32 to vector<8x128xf32>
    %48 = arith.mulf %47, %36 : vector<8x128xf32>
    %49 = arith.subf %32, %48 : vector<8x128xf32>
    %cst_9 = arith.constant 5.000000e-01 : f32
    %50 = vector.broadcast %cst_9 : f32 to vector<8x128xf32>
    %51 = arith.mulf %50, %36 : vector<8x128xf32>
    %52 = arith.addf %32, %51 : vector<8x128xf32>
    %cst_10 = arith.constant 5.000000e-01 : f32
    %53 = vector.broadcast %cst_10 : f32 to vector<8x128xf32>
    %54 = arith.mulf %53, %38 : vector<8x128xf32>
    %55 = arith.subf %34, %54 : vector<8x128xf32>
    %cst_11 = arith.constant 5.000000e-01 : f32
    %56 = vector.broadcast %cst_11 : f32 to vector<8x128xf32>
    %57 = arith.mulf %56, %38 : vector<8x128xf32>
    %58 = arith.addf %34, %57 : vector<8x128xf32>
    %cst_12 = arith.constant 5.000000e-01 : f32
    %59 = vector.broadcast %cst_12 : f32 to vector<8x128xf32>
    %60 = arith.mulf %59, %44 : vector<8x128xf32>
    %61 = arith.subf %40, %60 : vector<8x128xf32>
    %cst_13 = arith.constant 5.000000e-01 : f32
    %62 = vector.broadcast %cst_13 : f32 to vector<8x128xf32>
    %63 = arith.mulf %62, %44 : vector<8x128xf32>
    %64 = arith.addf %40, %63 : vector<8x128xf32>
    %cst_14 = arith.constant 5.000000e-01 : f32
    %65 = vector.broadcast %cst_14 : f32 to vector<8x128xf32>
    %66 = arith.mulf %65, %46 : vector<8x128xf32>
    %67 = arith.subf %42, %66 : vector<8x128xf32>
    %cst_15 = arith.constant 5.000000e-01 : f32
    %68 = vector.broadcast %cst_15 : f32 to vector<8x128xf32>
    %69 = arith.mulf %68, %46 : vector<8x128xf32>
    %70 = arith.addf %42, %69 : vector<8x128xf32>
    %71 = arith.subf %52, %49 : vector<8x128xf32>
    %72 = arith.subf %58, %55 : vector<8x128xf32>
    %73 = arith.mulf %71, %72 : vector<8x128xf32>
    %74 = arith.subf %64, %61 : vector<8x128xf32>
    %75 = arith.subf %70, %67 : vector<8x128xf32>
    %76 = arith.mulf %74, %75 : vector<8x128xf32>
    %77 = arith.minimumf %52, %64 : vector<8x128xf32>
    %78 = arith.maximumf %49, %61 : vector<8x128xf32>
    %79 = arith.subf %77, %78 : vector<8x128xf32>
    %cst_16 = arith.constant 0.000000e+00 : f32
    %80 = vector.broadcast %cst_16 : f32 to vector<8x128xf32>
    %81 = arith.maximumf %79, %80 : vector<8x128xf32>
    %82 = arith.minimumf %58, %70 : vector<8x128xf32>
    %83 = arith.maximumf %55, %67 : vector<8x128xf32>
    %84 = arith.subf %82, %83 : vector<8x128xf32>
    %cst_17 = arith.constant 0.000000e+00 : f32
    %85 = vector.broadcast %cst_17 : f32 to vector<8x128xf32>
    %86 = arith.maximumf %84, %85 : vector<8x128xf32>
    %87 = arith.mulf %81, %86 : vector<8x128xf32>
    %88 = arith.addf %73, %76 : vector<8x128xf32>
    %89 = arith.subf %88, %87 : vector<8x128xf32>
    %90 = tpu.reciprocal %89 {approx = true} : vector<8x128xf32> -> vector<8x128xf32>
    %91 = arith.mulf %87, %90 : vector<8x128xf32>
    %92 = arith.maximumf %52, %64 : vector<8x128xf32>
    %93 = arith.minimumf %49, %61 : vector<8x128xf32>
    %94 = arith.subf %92, %93 : vector<8x128xf32>
    %95 = arith.maximumf %58, %70 : vector<8x128xf32>
    %96 = arith.minimumf %55, %67 : vector<8x128xf32>
    %97 = arith.subf %95, %96 : vector<8x128xf32>
    %98 = arith.mulf %94, %97 : vector<8x128xf32>
    %99 = arith.subf %98, %89 : vector<8x128xf32>
    %100 = tpu.reciprocal %98 {approx = true} : vector<8x128xf32> -> vector<8x128xf32>
    %101 = arith.mulf %99, %100 : vector<8x128xf32>
    %102 = arith.subf %91, %101 : vector<8x128xf32>
    %cst_18 = arith.constant 1.000000e+00 : f32
    %103 = vector.broadcast %cst_18 : f32 to vector<8x128xf32>
    %104 = arith.subf %103, %102 : vector<8x128xf32>
    %105 = arith.mulf %104, %11 : vector<8x128xf32>
    %106 = vector.shape_cast %105 : vector<8x128xf32> to vector<1x8x128xf32>
    %cst_19 = arith.constant dense<0.000000e+00> : vector<1xf32>
    %107 = vector.multi_reduction <add>, %106, %cst_19 [1, 2] : vector<1x8x128xf32> to vector<1xf32>
    %108 = vector.shape_cast %107 : vector<1xf32> to vector<1x1x1xf32>
    %109 = vector.extract %108[0, 0, 0] : f32 from vector<1x1x1xf32>
    %cst_20 = arith.constant 1.000000e+00 : f32
    %110 = arith.mulf %109, %cst_20 : f32
    %c0_21 = arith.constant 0 : index
    %c0_22 = arith.constant 0 : index
    %111 = memref.load %arg3[%c0_21, %c0_22] : memref<1x2xf32, #tpu.memory_space<smem>>
    memref.store %30, %arg3[%c0_21, %c0_22] : memref<1x2xf32, #tpu.memory_space<smem>>
    %c0_23 = arith.constant 0 : index
    %c1 = arith.constant 1 : index
    %112 = memref.load %arg3[%c0_23, %c1] : memref<1x2xf32, #tpu.memory_space<smem>>
    memref.store %110, %arg3[%c0_23, %c1] : memref<1x2xf32, #tpu.memory_space<smem>>
    return
  }
}

</mosaic_0001>

<bundles_post_ra>
// kernel: _l1_giou_forward.1
= control target key start
LH: loop header
LB: loop body
LE: loop exit
PB: predicated region body
PF: predicated region fallthrough
CT: control target
= control target key end

     0   :  { %v24_v3 = vlaneseq  ;;  %s205_s0 = inlined_call_operand.<no memory space> [shape: s32[1,1], index: 0, kind: input, shape index: {}]   ;;  %s206_s1 = inlined_call_operand.vmem [shape: f32[4,8,128], index: 1, kind: input, shape index: {}]   ;;  %s207_s2 = inlined_call_operand.vmem [shape: f32[4,8,128], index: 2, kind: input, shape index: {}]   ;;  %s208_s3 = inlined_call_operand.vmem [shape: f32[1,2], index: 3, kind: output, shape index: {}]  }
   0x1   :  { %v16_v0 = vld [vmem:[%s206_s1] sm:$0xff]  ;;  %v17_v1 = vld [vmem:[%s206_s1 + $0x8] sm:$0xff]  ;;  %v18_v2 = vld [vmem:[%s206_s1 + $0x10] sm:$0xff]  ;;  %v31_v7 = vstv %s205_s0 }
   0x2   :  { %v19_v4 = vld [vmem:[%s206_s1 + $0x18] sm:$0xff]  ;;  %v20_v5 = vld [vmem:[%s207_s2] sm:$0xff]  ;;  %v21_v6 = vld [vmem:[%s207_s2 + $0x8] sm:$0xff]  ;;  %v56_v8 = vmul.f32 0.5, %v18_v2  ;;  %v25_v11 = vshrl.u32 %v24_v3, 7  ;;  %v27_v12 = vand.u32 127, %v24_v3 }
   0x3   :  { %v22_v9 = vld [vmem:[%s207_s2 + $0x10] sm:$0xff]  ;;  %v23_v10 = vld [vmem:[%s207_s2 + $0x18] sm:$0xff]  ;;  %v35_v13 = vsub.f32 %v16_v0, %v20_v5  ;;  %v36_v14 = vsub.f32 %v17_v1, %v21_v6 }
   0x4   :  { %9 = vsyncpa [#allocation4], 0  ;;  %v37_v15 = vsub.f32 %v18_v2, %v22_v9  ;;  %v38_v16 = vsub.f32 %v19_v4, %v23_v10  ;;  %v57_v17 = vsub.f32 %v16_v0, %v56_v8  ;;  %v58_v18 = vadd.f32 %v56_v8, %v16_v0  ;;  %s118_s30 = sshll.u32 %s208_s3, 4  ;;  %s154_s5 = smov [#allocation3]   ;;  %s119_s30 = int_to_ptr.vmem [resolvable:$true] %s118_s30 }
   0x5   :  { %v28_v19 = vmul.u32 128, %v25_v11  ;;  %v39_v20 = vand.u32 2147483647, %v35_v13  ;;  %v40_v21 = vand.u32 2147483647, %v36_v14  ;;  %v59_v22 = vmul.f32 0.5, %v19_v4 }
   0x6   :  { %v41_v23 = vand.u32 2147483647, %v37_v15  ;;  %v42_v24 = vand.u32 2147483647, %v38_v16  ;;  %v62_v25 = vmul.f32 0.5, %v22_v9  ;;  %v65_v26 = vmul.f32 0.5, %v23_v10 }
   0x7   :  { %v29_v27 = vadd.s32 %v28_v19, %v27_v12  ;;  %v43_v28 = vadd.f32 %v40_v21, %v39_v20  ;;  %v60_v29 = vsub.f32 %v17_v1, %v59_v22  ;;  %v61_v30 = vadd.f32 %v59_v22, %v17_v1 }
   0x8   :  { %v63_v31 = vsub.f32 %v20_v5, %v62_v25  ;;  %v64_v32 = vadd.f32 %v62_v25, %v20_v5  ;;  %v66_v33 = vsub.f32 %v21_v6, %v65_v26  ;;  %v67_v34 = vadd.f32 %v65_v26, %v21_v6 }
   0x9   :  { %vm32_vm0 = vcmp.lt.s32.totalorder %v29_v27, %v31_v7  ;;  %v44_v35 = vadd.f32 %v43_v28, %v41_v23  ;;  %v68_v36 = vsub.f32 %v58_v18, %v57_v17  ;;  %v69_v37 = vsub.f32 %v61_v30, %v60_v29 }
   0xa   :  { %v153_v38 = vmov 0.0   ;;  %v71_v40 = vsub.f32 %v64_v32, %v63_v31  ;;  %v72_v41 = vsub.f32 %v67_v34, %v66_v33  ;;  %v90_v42 = vmax.f32 %v61_v30, %v67_v34 }
   0xb   :  { %v128_v39 = vsel %vm32_vm0, 1.0, %v153_v38  ;;  %v45_v43 = vadd.f32 %v44_v35, %v42_v24  ;;  %v91_v44 = vmin.f32 %v60_v29, %v66_v33  ;;  %v70_v45 = vmul.f32 %v69_v37, %v68_v36 }
   0xc   :  { %v74_v46 = vmin.f32 %v58_v18, %v64_v32  ;;  %v73_v47 = vmul.f32 %v72_v41, %v71_v40  ;;  %v75_v48 = vmax.f32 %v57_v17, %v63_v31  ;;  %v78_v49 = vmin.f32 %v61_v30, %v67_v34 }
   0xd   :  { %v79_v50 = vmax.f32 %v60_v29, %v66_v33  ;;  %v46_v51 = vmul.f32 %v128_v39, %v45_v43  ;;  %v87_v52 = vmax.f32 %v58_v18, %v64_v32  ;;  %v88_v53 = vmin.f32 %v57_v17, %v63_v31 }
   0xe   :  { %v92_v54 = vsub.f32 %v90_v42, %v91_v44  ;;  %v76_v55 = vsub.f32 %v74_v46, %v75_v48  ;;  %v83_v60 = vadd.f32 %v73_v47, %v70_v45 }
   0xf   :  { %v80_v56 = vsub.f32 %v78_v49, %v79_v50  ;;  %47 = vadd.xlane.f32.xlu0 %v46_v51  ;;  %v89_v57 = vsub.f32 %v87_v52, %v88_v53 }
  0x10   :  { %v77_v58 = vmax.f32 %v76_v55, 0.0 }
  0x11   :  { %v81_v59 = vmax.f32 %v80_v56, 0.0  ;;  %v93_v61 = vmul.f32 %v92_v54, %v89_v57 }
  0x13   :  { %v82_v62 = vmul.f32 %v81_v59, %v77_v58  ;;  %135 = vrcp.f32 %v93_v61 }
  0x15   :  { %v84_v63 = vsub.f32 %v83_v60, %v82_v62 }
  0x17   :  { %137 = vrcp.f32 %v84_v63  ;;  %v94_v0 = vsub.f32 %v93_v61, %v84_v63 }
  0x19   :  { %v136_v1 = vpop.eup %135 }
  0x1a   :  { %v96_v2 = vmul.f32 %v136_v1, %v94_v0 }
  0x1d   :  { %v138_v3 = vpop.eup %137 }
  0x1e   :  { %v86_v4 = vmul.f32 %v138_v3, %v82_v62 }
  0x20   :  { %v97_v5 = vsub.f32 %v86_v4, %v96_v2 }
  0x22   :  { %v98_v6 = vsub.f32 1.0, %v97_v5 }
  0x24   :  { %v99_v7 = vmul.f32 %v128_v39, %v98_v6 }
  0x26   :  { %100 = vadd.xlane.f32.xlu0 %v99_v7 }
  0x82   :  { %v48_v8 = vpop.xlane.xlu0 %47 }
  0x83   :  { %v49_v9 = vrot.slane %v48_v8, 4 }
  0x85   :  { %v50_v10 = vadd.f32 %v49_v9, %v48_v8 }
  0x87   :  { %v51_v11 = vrot.slane %v50_v10, 2 }
  0x89   :  { %v52_v12 = vadd.f32 %v51_v11, %v50_v10 }
  0x8b   :  { %v53_v13 = vrot.slane %v52_v12, 1 }
  0x8d   :  { %v54_v14 = vadd.f32 %v53_v13, %v52_v12 }
  0x8f   :  { %129 = vpush %v54_v14 }
  0x99   :  { %v101_v15 = vpop.xlane.xlu0 %100 }
  0x9a   :  { %v102_v16 = vrot.slane %v101_v15, 4 }
  0x9c   :  { %v103_v17 = vadd.f32 %v102_v16, %v101_v15 }
  0x9e   :  { %v104_v18 = vrot.slane %v103_v17, 2 }
  0xa0   :  { %v105_v19 = vadd.f32 %v104_v18, %v103_v17 }
  0xa2   :  { %v106_v20 = vrot.slane %v105_v19, 1 }
  0xa4   :  { %v107_v21 = vadd.f32 %v106_v20, %v105_v19 }
  0xa6   :  { %131 = vpush %v107_v21 }
  0xc0   :  { %s130_s0 = spop %129 }
  0xc1   :  { %110 = sst [smem:[#allocation3]] %s130_s0 }
  0xd7   :  { %s132_s4 = spop %131 }
  0xd8   :  { %112 = sst [smem:[#allocation3 + $0x1]] %s132_s4 }
  0xd9   :  { %121 = dma.smem_to_vmem %s154_s5, 16, %s119_s30, [#allocation4]  }
  0xda   :  { %151 = dma.done.wait [#allocation4], 16  }
  0xdb   :  { %152 = vsyncadd [#allocation4], 4294967280 }
  0xdc   :  { %126 = sfence }
  0xdd   :  { %127 = vsyncpa [#allocation4], 1 }

</bundles_post_ra>
